<compile_context>
chip_gen: v6e
topology: v6e:2x2x1
jax: 0.10.0
libtpu: 0.0.40
codegen_flags: <defaults>
</compile_context>

<pallas_src>
import functools

import jax
import jax.numpy as jnp
from jax.experimental import pallas as pl
from jax.experimental.pallas import tpu as pltpu


# ----------------------------- kernels --------------------------------------


def _mce_reduce_kernel(x_ref, t_ref, sum_ref, cnt_ref, *, ignore_index, n_rows,
                       steps_per_core):
    """Accumulates per-core sum of row losses and count of valid rows.

    x_ref/t_ref: (tm, C) tiles.  sum_ref/cnt_ref: (1, 1, 1) per-core accumulator
    output blocks, resident in VMEM across the trailing 'arbitrary' grid axis.
    """
    c = pl.program_id(0)       # core / row-range partition (parallel axis)
    i = pl.program_id(1)       # step within this core's row range (arbitrary)

    @pl.when(i == 0)
    def _():
        sum_ref[...] = jnp.zeros_like(sum_ref)
        cnt_ref[...] = jnp.zeros_like(cnt_ref)

    x = x_ref[...].astype(jnp.float32)          # (tm, C)
    t = t_ref[...].astype(jnp.float32)          # (tm, C)
    tm, C = x.shape

    # Logical (unclamped) tile index; the input index_map clamps the DMA to the
    # last real tile, so duplicated / overhang rows must be masked here.
    tile = c * steps_per_core + i
    row = tile * tm + jax.lax.broadcasted_iota(jnp.int32, (tm, 1), 0)
    in_bounds = row < n_rows                                         # (tm, 1)

    # Sanitize BEFORE max/exp: garbage (possibly inf/NaN) in the partial last
    # tile must not reach the accumulator (NaN * 0 == NaN).
    x = jnp.where(in_bounds, x, 0.0)
    t = jnp.where(in_bounds, t, 0.0)
    valid = in_bounds.astype(jnp.float32)                            # (tm, 1)

    if ignore_index >= 0:
        # exclude the ignored class column in-kernel (no copies in the wrapper)
        col = jax.lax.broadcasted_iota(jnp.int32, (tm, C), 1)
        keep = col != ignore_index
        x_lse = jnp.where(keep, x, -jnp.inf)    # drop column from max / LSE
        t_m = jnp.where(keep, t, 0.0)           # drop column from weighted sum
        # rows marked as "ignored" (target[:, ignore_index] == 1) don't count
        t_ign = t[:, ignore_index:ignore_index + 1]                  # (tm, 1)
        valid = valid * (t_ign != 1.0).astype(jnp.float32)
    else:
        x_lse = x
        t_m = t

    # numerically-stable log-softmax over the (possibly masked) class axis
    m = jnp.max(x_lse, axis=-1, keepdims=True)                       # (tm, 1)
    lse = jnp.log(jnp.sum(jnp.exp(x_lse - m), axis=-1, keepdims=True)) + m
    # -t * log_softmax(x) = t * (lse - x); ignored column has t_m == 0
    loss = jnp.sum(t_m * (lse - x), axis=-1, keepdims=True)          # (tm, 1)

    sum_ref[...] = sum_ref[...] + jnp.sum(loss * valid)
    cnt_ref[...] = cnt_ref[...] + jnp.sum(valid)


def _mce_row_kernel(x_ref, t_ref, loss_ref, *, ignore_index, n_rows):
    """Per-row losses (reduction='none' path). loss_ref: (tm, 1)."""
    i = pl.program_id(0)
    x = x_ref[...].astype(jnp.float32)
    t = t_ref[...].astype(jnp.float32)
    tm, C = x.shape

    row = i * tm + jax.lax.broadcasted_iota(jnp.int32, (tm, 1), 0)
    in_bounds = row < n_rows
    x = jnp.where(in_bounds, x, 0.0)
    t = jnp.where(in_bounds, t, 0.0)

    if ignore_index >= 0:
        col = jax.lax.broadcasted_iota(jnp.int32, (tm, C), 1)
        keep = col != ignore_index
        x_lse = jnp.where(keep, x, -jnp.inf)
        t_m = jnp.where(keep, t, 0.0)
        t_ign = t[:, ignore_index:ignore_index + 1]
        valid = (t_ign != 1.0).astype(jnp.float32)
    else:
        x_lse = x
        t_m = t
        valid = None

    m = jnp.max(x_lse, axis=-1, keepdims=True)
    lse = jnp.log(jnp.sum(jnp.exp(x_lse - m), axis=-1, keepdims=True)) + m
    loss = jnp.sum(t_m * (lse - x), axis=-1, keepdims=True)
    if valid is not None:
        loss = loss * valid
    loss_ref[...] = loss


# ----------------------------- wrapper ---------------------------------------


def _round_up(v, m):
    return (v + m - 1) // m * m


def _vmem_budget():
    """Returns (tile_budget_bytes, vmem_limit_bytes), generation-aware.

    v5e/v6e have 128 MiB VMEM per core -> big tiles and a high scoped limit.
    v7x has 64 MiB -> conservative values (also the safe fallback).
    """
    cap = None
    try:
        cap = getattr(pltpu.get_tpu_info(), "vmem_capacity_bytes", None)
    except Exception:
        cap = None
    if cap is not None and cap >= 100 * 1024 * 1024:     # v5e / v6e (128 MiB)
        return 64 * 1024 * 1024, 96 * 1024 * 1024
    return 24 * 1024 * 1024, 40 * 1024 * 1024            # v7x / unknown


def _pick_tm(n_rows, n_cls, x_bytes, t_bytes, tile_budget, align):
    """Largest row tile (multiple of `align`, <=1024) fitting the VMEM budget.

    Budget covers the double-buffered input tiles plus ~4 f32 in-kernel
    intermediates (x, t, masked/exp copies) per element.
    """
    per_row = n_cls * (2 * (x_bytes + t_bytes) + 4 * 4)
    tm = tile_budget // per_row
    tm = (tm // align) * align
    tm = max(align, min(1024, tm))
    tm = min(tm, _round_up(n_rows, align))
    return int(tm)


@functools.partial(jax.jit, static_argnames=("reduction", "ignore_index"))
def multip_cross_entropy_loss(input, target, *, reduction="mean",
                              ignore_index=-100):
    """JAX/Pallas port of MultipCrossEntropyLoss.forward."""
    N, C = input.shape
    xb = input.dtype.itemsize
    tb = target.dtype.itemsize
    tile_budget, vmem_limit = _vmem_budget()
    align = max(8, 32 // max(1, min(xb, tb)))   # 8 f32 / 16 bf16 / 32 int8
    tm = _pick_tm(N, C, xb, tb, tile_budget, align)
    num_tiles = pl.cdiv(N, tm)

    if reduction in ("mean", "sum"):
        # Leading 'parallel' axis splits the row-tile range across TensorCores
        # (2x on v7x; a no-op serial loop on 1-TC v5e/v6e).
        P = 2 if num_tiles >= 2 else 1
        S = pl.cdiv(num_tiles, P)
        last_tile = num_tiles - 1

        def in_map(c, i):
            # Clamp so the rectangular (P, S) grid never addresses a block
            # fully outside the array; duplicated tiles are masked in-kernel.
            return (jnp.minimum(c * S + i, last_tile), 0)

        kernel = functools.partial(
            _mce_reduce_kernel, ignore_index=ignore_index, n_rows=N,
            steps_per_core=S)
        ce = pl.CostEstimate(
            flops=int(8 * N * C),
            transcendentals=int(N * C),
            bytes_accessed=int(N * C * (xb + tb) + 8 * P))

        loss_sum, count = pl.pallas_call(
            kernel,
            out_shape=(jax.ShapeDtypeStruct((P, 1, 1), jnp.float32),
                       jax.ShapeDtypeStruct((P, 1, 1), jnp.float32)),
            grid_spec=pltpu.PrefetchScalarGridSpec(
                num_scalar_prefetch=0,
                grid=(P, S),
                in_specs=[
                    pl.BlockSpec((tm, C), in_map),
                    pl.BlockSpec((tm, C), in_map),
                ],
                out_specs=(
                    pl.BlockSpec((1, 1, 1), lambda c, i: (c, 0, 0)),
                    pl.BlockSpec((1, 1, 1), lambda c, i: (c, 0, 0)),
                ),
            ),
            compiler_params=pltpu.CompilerParams(
                dimension_semantics=("parallel", "arbitrary"),
                vmem_limit_bytes=vmem_limit),
            cost_estimate=ce,
        )(input, target)

        s = jnp.sum(loss_sum)            # reduce the per-core partials
        if ignore_index >= 0:
            cnt = jnp.sum(count)
            if reduction == "mean":
                return jnp.where(cnt == 0, 0.0, s / jnp.maximum(cnt, 1.0))
            return jnp.where(cnt == 0, 0.0, s)
        if reduction == "mean":
            return s / jnp.float32(N)
        return s

    # reduction == 'none'
    kernel = functools.partial(_mce_row_kernel, ignore_index=ignore_index,
                               n_rows=N)
    Np = num_tiles * tm
    ce = pl.CostEstimate(
        flops=int(8 * N * C),
        transcendentals=int(N * C),
        bytes_accessed=int(N * C * (xb + tb) + Np * 4))
    out = pl.pallas_call(
        kernel,
        out_shape=jax.ShapeDtypeStruct((Np, 1), jnp.float32),
        grid_spec=pltpu.PrefetchScalarGridSpec(
            num_scalar_prefetch=0,
            grid=(num_tiles,),
            in_specs=[
                pl.BlockSpec((tm, C), lambda i: (i, 0)),
                pl.BlockSpec((tm, C), lambda i: (i, 0)),
            ],
            out_specs=pl.BlockSpec((tm, 1), lambda i: (i, 0)),
        ),
        compiler_params=pltpu.CompilerParams(
            dimension_semantics=("parallel",),
            vmem_limit_bytes=vmem_limit),
        cost_estimate=ce,
    )(input, target)
    # TODO(synk): for ignore_index>=0 and reduction='none', PyTorch returns a
    # data-dependent-shape gather output[valid]; we return masked per-row losses.
    return out[:N, 0]


# ----------------------------- references & test ------------------------------


def _reference(x, t, reduction, ignore_index):
    x = x.astype(jnp.float32)
    t = t.astype(jnp.float32)
    if ignore_index >= 0:
        C = t.shape[-1]
        notice = [i for i in range(C) if i != ignore_index]
        logp = jax.nn.log_softmax(x[:, notice], axis=1)
        out = jnp.sum(-t[:, notice] * logp, axis=1)
        valid = (t[:, ignore_index] != 1).astype(jnp.float32)
        nvalid = jnp.sum(valid)
        if reduction == "mean":
            return jnp.where(nvalid == 0, 0.0,
                             jnp.sum(out * valid) / jnp.maximum(nvalid, 1.0))
        if reduction == "sum":
            return jnp.where(nvalid == 0, 0.0, jnp.sum(out * valid))
        return out * valid
    logp = jax.nn.log_softmax(x, axis=1)
    out = jnp.sum(-t * logp, axis=1)
    if reduction == "mean":
        return jnp.mean(out)
    if reduction == "sum":
        return jnp.sum(out)
    return out


if __name__ == "__main__":
    key = jax.random.PRNGKey(0)
    k1, k2, k3, k4 = jax.random.split(key, 4)

    # --- small shapes: batch of 8 rows, 16 classes ---
    N, C = 8, 16
    logits = jax.random.normal(k1, (N, C), dtype=jnp.float32)
    # target: per-row probability distribution (soft labels), as MCE expects
    target = jax.nn.softmax(jax.random.normal(k2, (N, C), dtype=jnp.float32),
                            axis=1)

    # default path: reduction='mean', ignore_index=-100
    out = jax.block_until_ready(multip_cross_entropy_loss(logits, target))
    ref = _reference(logits, target, "mean", -100)
    assert jnp.allclose(out, ref, rtol=1e-5, atol=1e-5), (out, ref)

    # ignore_index >= 0 path: mark rows 0 and 3 as ignored (one-hot at class 2)
    ig = 2
    onehot = jnp.zeros((C,), jnp.float32).at[ig].set(1.0)
    target_ig = target.at[0].set(onehot).at[3].set(onehot)
    out2 = jax.block_until_ready(
        multip_cross_entropy_loss(logits, target_ig, reduction="mean",
                                  ignore_index=ig))
    ref2 = _reference(logits, target_ig, "mean", ig)
    assert jnp.allclose(out2, ref2, rtol=1e-5, atol=1e-5), (out2, ref2)

    # reduction='none' path
    out3 = jax.block_until_ready(
        multip_cross_entropy_loss(logits, target, reduction="none"))
    ref3 = _reference(logits, target, "none", -100)
    assert jnp.allclose(out3, ref3, rtol=1e-5, atol=1e-5), (out3, ref3)

    # --- multi-tile path: N not a multiple of tm; exercises the no-pad row
    #     masking, the partial last tile and the per-core partial sums ---
    N2, C2 = 2500, 24
    x2 = jax.random.normal(k3, (N2, C2), dtype=jnp.float32)
    t2 = jax.nn.softmax(jax.random.normal(k4, (N2, C2), dtype=jnp.float32),
                        axis=1)
    out4 = jax.block_until_ready(
        multip_cross_entropy_loss(x2, t2, reduction="sum"))
    ref4 = _reference(x2, t2, "sum", -100)
    assert jnp.allclose(out4, ref4, rtol=1e-4, atol=1e-2), (out4, ref4)

    print("KERNEL_OK")
</pallas_src>

<mosaic_0001>
module attributes {stable_mosaic.version = 11 : i64} {
  func.func @_mce_reduce_kernel(%arg0: i32, %arg1: i32, %arg2: memref<8x16xf32, #tpu.memory_space<vmem>>, %arg3: memref<8x16xf32, #tpu.memory_space<vmem>>, %arg4: memref<1x1x1xf32, #tpu.memory_space<vmem>>, %arg5: memref<1x1x1xf32, #tpu.memory_space<vmem>>) attributes {dimension_semantics = [#tpu.dimension_semantics<parallel>, #tpu.dimension_semantics<arbitrary>], iteration_bounds = array<i64: 1, 1>, scalar_prefetch = 0 : i64, scratch_operands = 0 : i64, tpu.core_type = #tpu.core_type<tc>, window_params = [{transform_indices = @transform_0, window_bounds = array<i64: 8, 16>}, {transform_indices = @transform_1, window_bounds = array<i64: 8, 16>}, {transform_indices = @transform_2, window_bounds = array<i64: 1, 1, 1>}, {transform_indices = @transform_3, window_bounds = array<i64: 1, 1, 1>}]} {
    %c0_i32 = arith.constant 0 : i32
    %0 = arith.cmpi eq, %arg1, %c0_i32 : i32
    %1 = arith.extui %0 : i1 to i32
    %c0_i32_0 = arith.constant 0 : i32
    %2 = arith.cmpi ne, %1, %c0_i32_0 : i32
    scf.if %2 {
      %cst_23 = arith.constant 0.000000e+00 : f32
      %54 = vector.broadcast %cst_23 : f32 to vector<1x1x1xf32>
      %c0_24 = arith.constant 0 : index
      %c0_25 = arith.constant 0 : index
      %c0_26 = arith.constant 0 : index
      %55 = vector.load %arg4[%c0_24, %c0_25, %c0_26] : memref<1x1x1xf32, #tpu.memory_space<vmem>>, vector<1x1x1xf32>
      tpu.vector_store %arg4[%c0_24, %c0_25, %c0_26], %54 {strides = array<i32>} : memref<1x1x1xf32, #tpu.memory_space<vmem>>, vector<1x1x1xf32>,
      %cst_27 = arith.constant 0.000000e+00 : f32
      %56 = vector.broadcast %cst_27 : f32 to vector<1x1x1xf32>
      %c0_28 = arith.constant 0 : index
      %c0_29 = arith.constant 0 : index
      %c0_30 = arith.constant 0 : index
      %57 = vector.load %arg5[%c0_28, %c0_29, %c0_30] : memref<1x1x1xf32, #tpu.memory_space<vmem>>, vector<1x1x1xf32>
      tpu.vector_store %arg5[%c0_28, %c0_29, %c0_30], %56 {strides = array<i32>} : memref<1x1x1xf32, #tpu.memory_space<vmem>>, vector<1x1x1xf32>,
    } else {
    }
    %c0 = arith.constant 0 : index
    %c0_1 = arith.constant 0 : index
    %3 = vector.load %arg2[%c0, %c0_1] : memref<8x16xf32, #tpu.memory_space<vmem>>, vector<8x16xf32>
    %c0_2 = arith.constant 0 : index
    %c0_3 = arith.constant 0 : index
    %4 = vector.load %arg3[%c0_2, %c0_3] : memref<8x16xf32, #tpu.memory_space<vmem>>, vector<8x16xf32>
    %c1_i32 = arith.constant 1 : i32
    %5 = arith.muli %arg0, %c1_i32 : i32
    %6 = arith.addi %5, %arg1 : i32
    %c8_i32 = arith.constant 8 : i32
    %7 = arith.muli %6, %c8_i32 : i32
    %8 = tpu.iota {dimensions = array<i32: 0>} : vector<8x1xi32>
    %9 = vector.broadcast %7 : i32 to vector<8x1xi32>
    %10 = arith.addi %9, %8 : vector<8x1xi32>
    %c8_i32_4 = arith.constant 8 : i32
    %11 = vector.broadcast %c8_i32_4 : i32 to vector<8x1xi32>
    %12 = arith.cmpi slt, %10, %11 : vector<8x1xi32>
    %cst = arith.constant 0.000000e+00 : f32
    %13 = vector.shape_cast %12 : vector<8x1xi1> to vector<8x1xi1>
    %14 = vector.broadcast %13 : vector<8x1xi1> to vector<8x16xi1>
    %15 = vector.broadcast %cst : f32 to vector<8x16xf32>
    %16 = arith.select %14, %3, %15 : vector<8x16xi1>, vector<8x16xf32>
    %cst_5 = arith.constant 0.000000e+00 : f32
    %17 = vector.shape_cast %12 : vector<8x1xi1> to vector<8x1xi1>
    %18 = vector.broadcast %17 : vector<8x1xi1> to vector<8x16xi1>
    %19 = vector.broadcast %cst_5 : f32 to vector<8x16xf32>
    %20 = arith.select %18, %4, %19 : vector<8x16xi1>, vector<8x16xf32>
    %21 = arith.extui %12 : vector<8x1xi1> to vector<8x1xi32>
    %22 = arith.sitofp %21 : vector<8x1xi32> to vector<8x1xf32>
    %cst_6 = arith.constant dense<0xFF800000> : vector<8xf32>
    %23 = vector.multi_reduction <maximumf>, %16, %cst_6 [1] : vector<8x16xf32> to vector<8xf32>
    %24 = vector.shape_cast %23 : vector<8xf32> to vector<8x1xf32>
    %25 = vector.broadcast %24 : vector<8x1xf32> to vector<8x16xf32>
    %26 = arith.subf %16, %25 : vector<8x16xf32>
    %27 = math.exp %26 : vector<8x16xf32>
    %cst_7 = arith.constant dense<0.000000e+00> : vector<8xf32>
    %28 = vector.multi_reduction <add>, %27, %cst_7 [1] : vector<8x16xf32> to vector<8xf32>
    %29 = vector.shape_cast %28 : vector<8xf32> to vector<8x1xf32>
    %30 = math.log %29 : vector<8x1xf32>
    %31 = arith.addf %30, %24 : vector<8x1xf32>
    %32 = vector.broadcast %31 : vector<8x1xf32> to vector<8x16xf32>
    %33 = arith.subf %32, %16 : vector<8x16xf32>
    %34 = arith.mulf %20, %33 : vector<8x16xf32>
    %cst_8 = arith.constant dense<0.000000e+00> : vector<8xf32>
    %35 = vector.multi_reduction <add>, %34, %cst_8 [1] : vector<8x16xf32> to vector<8xf32>
    %36 = vector.shape_cast %35 : vector<8xf32> to vector<8x1xf32>
    %c0_9 = arith.constant 0 : index
    %c0_10 = arith.constant 0 : index
    %c0_11 = arith.constant 0 : index
    %37 = vector.load %arg4[%c0_9, %c0_10, %c0_11] : memref<1x1x1xf32, #tpu.memory_space<vmem>>, vector<1x1x1xf32>
    %38 = arith.mulf %36, %22 : vector<8x1xf32>
    %39 = vector.shape_cast %38 : vector<8x1xf32> to vector<1x8x1xf32>
    %cst_12 = arith.constant dense<0.000000e+00> : vector<1xf32>
    %40 = vector.multi_reduction <add>, %39, %cst_12 [1, 2] : vector<1x8x1xf32> to vector<1xf32>
    %41 = vector.shape_cast %40 : vector<1xf32> to vector<1x1x1xf32>
    %42 = vector.extract %41[0, 0, 0] : f32 from vector<1x1x1xf32>
    %43 = vector.broadcast %42 : f32 to vector<1x1x1xf32>
    %44 = arith.addf %37, %43 : vector<1x1x1xf32>
    %c0_13 = arith.constant 0 : index
    %c0_14 = arith.constant 0 : index
    %c0_15 = arith.constant 0 : index
    %45 = vector.load %arg4[%c0_13, %c0_14, %c0_15] : memref<1x1x1xf32, #tpu.memory_space<vmem>>, vector<1x1x1xf32>
    tpu.vector_store %arg4[%c0_13, %c0_14, %c0_15], %44 {strides = array<i32>} : memref<1x1x1xf32, #tpu.memory_space<vmem>>, vector<1x1x1xf32>,
    %c0_16 = arith.constant 0 : index
    %c0_17 = arith.constant 0 : index
    %c0_18 = arith.constant 0 : index
    %46 = vector.load %arg5[%c0_16, %c0_17, %c0_18] : memref<1x1x1xf32, #tpu.memory_space<vmem>>, vector<1x1x1xf32>
    %47 = vector.shape_cast %22 : vector<8x1xf32> to vector<1x8x1xf32>
    %cst_19 = arith.constant dense<0.000000e+00> : vector<1xf32>
    %48 = vector.multi_reduction <add>, %47, %cst_19 [1, 2] : vector<1x8x1xf32> to vector<1xf32>
    %49 = vector.shape_cast %48 : vector<1xf32> to vector<1x1x1xf32>
    %50 = vector.extract %49[0, 0, 0] : f32 from vector<1x1x1xf32>
    %51 = vector.broadcast %50 : f32 to vector<1x1x1xf32>
    %52 = arith.addf %46, %51 : vector<1x1x1xf32>
    %c0_20 = arith.constant 0 : index
    %c0_21 = arith.constant 0 : index
    %c0_22 = arith.constant 0 : index
    %53 = vector.load %arg5[%c0_20, %c0_21, %c0_22] : memref<1x1x1xf32, #tpu.memory_space<vmem>>, vector<1x1x1xf32>
    tpu.vector_store %arg5[%c0_20, %c0_21, %c0_22], %52 {strides = array<i32>} : memref<1x1x1xf32, #tpu.memory_space<vmem>>, vector<1x1x1xf32>,
    return
  }
  func.func @transform_0(%arg0: i32, %arg1: i32) -> (i32, i32) {
    %c1_i32 = arith.constant 1 : i32
    %0 = arith.muli %arg0, %c1_i32 : i32
    %1 = arith.addi %0, %arg1 : i32
    %c0_i32 = arith.constant 0 : i32
    %2 = arith.minsi %1, %c0_i32 : i32
    %c0_i32_0 = arith.constant 0 : i32
    %c0_i32_1 = arith.constant 0 : i32
    return %2, %c0_i32_0 : i32, i32
  }
  func.func @transform_1(%arg0: i32, %arg1: i32) -> (i32, i32) {
    %c1_i32 = arith.constant 1 : i32
    %0 = arith.muli %arg0, %c1_i32 : i32
    %1 = arith.addi %0, %arg1 : i32
    %c0_i32 = arith.constant 0 : i32
    %2 = arith.minsi %1, %c0_i32 : i32
    %c0_i32_0 = arith.constant 0 : i32
    %c0_i32_1 = arith.constant 0 : i32
    return %2, %c0_i32_0 : i32, i32
  }
  func.func @transform_2(%arg0: i32, %arg1: i32) -> (i32, i32, i32) {
    %c0_i32 = arith.constant 0 : i32
    %c0_i32_0 = arith.constant 0 : i32
    %c0_i32_1 = arith.constant 0 : i32
    return %arg0, %c0_i32, %c0_i32_0 : i32, i32, i32
  }
  func.func @transform_3(%arg0: i32, %arg1: i32) -> (i32, i32, i32) {
    %c0_i32 = arith.constant 0 : i32
    %c0_i32_0 = arith.constant 0 : i32
    %c0_i32_1 = arith.constant 0 : i32
    return %arg0, %c0_i32, %c0_i32_0 : i32, i32, i32
  }
}

</mosaic_0001>

<bundles_post_ra>
// kernel: multip_cross_entropy_loss.1
= control target key start
LH: loop header
LB: loop body
LE: loop exit
PB: predicated region body
PF: predicated region fallthrough
CT: control target
= control target key end

     0   :  { %9 = vsyncpa [#allocation3], 0  ;;  %s306_s0 = inlined_call_operand.hbm [shape: f32[8,16], index: 0, kind: input, shape index: {}]   ;;  %s307_s1 = inlined_call_operand.hbm [shape: f32[8,16], index: 1, kind: input, shape index: {}]   ;;  %s308_s2 = inlined_call_operand.hbm [shape: f32[1,1,1], index: 2, kind: output, shape index: {0}]   ;;  %s309_s3 = inlined_call_operand.hbm [shape: f32[1,1,1], index: 3, kind: output, shape index: {1}]  }
   0x1   :  { %10 = vsyncpa [#allocation6], 0 }
   0x2   :  { %11 = vsyncpa [#allocation4], 0 }
   0x3   :  { %12 = vsyncpa [#allocation9], 0  ;;  %s260_s12 = smov [#allocation2]   ;;  %s261_s14 = smov [#allocation5]  }
   0x4   :  { %s24_s13 = sshll.u32 %s260_s12, 4  ;;  %s39_s15 = sshll.u32 %s261_s14, 4  ;;  %s25_s13 = int_to_ptr.vmem [resolvable:$true] %s24_s13  ;;  %s40_s15 = int_to_ptr.vmem [resolvable:$true] %s39_s15 }
   0x5   :  { %s180_s16 = scalar_lea.vmem %s25_s13, 128  ;;  %p185_p1 = scmp.lt.s32.totalorder %s25_s13, %s25_s13 }
   0x6   :  { %p181_p0 = scmp.ne.s32.totalorder %s25_s13, %s180_s16  ;;  %p186_p2 = scmp.lt.s32.totalorder %s180_s16, %s180_s16 }
   0x8   :  { %p187_p3 = por %p186_p2, %p185_p1 }
   0xa   :  { %p188_p4 = pnand %p187_p3, %p181_p0 }
   0xc   :  { %191 = shalt.err (!%p188_p4)
}
   0xd   :  { %27 = dma.hbm_to_vmem [thread:$0]  %s306_s0, 128, %s25_s13, [#allocation3]  }
   0xe   :  { %s200_s19 = scalar_lea.vmem %s40_s15, 128  ;;  %p205_p6 = scmp.lt.s32.totalorder %s40_s15, %s40_s15 }
   0xf   :  { %p201_p5 = scmp.ne.s32.totalorder %s40_s15, %s200_s19  ;;  %p206_p7 = scmp.lt.s32.totalorder %s200_s19, %s200_s19 }
  0x11   :  { %p207_p8 = por %p206_p7, %p205_p6 }
  0x13   :  { %p208_p9 = pnand %p207_p8, %p201_p5 }
  0x15   :  { %211 = shalt.err (!%p208_p9)
}
  0x16   :  { %42 = dma.hbm_to_vmem [thread:$0]  %s307_s1, 128, %s40_s15, [#allocation6]  }
  0x17   :  { %252 = dma.done.wait [#allocation3], 128  }
  0x18   :  { %253 = vsyncadd [#allocation3], 4294967168 }
  0x19   :  { %254 = dma.done.wait [#allocation6], 128  }
  0x1a   :  { %255 = vsyncadd [#allocation6], 4294967168  ;;  %vm76_vm0 = vcmask 130048   ;;  %v62_v0 = vld [vmem:[#allocation2] sm:$0xff]  ;;  %vm59_vm1 = vcmask 0   ;;  %vm96_vm2 = vcmask 7168  }
  0x1b   :  { %v77_v1 = vsel %vm76_vm0, %v62_v0, -inf  ;;  %v262_v7 = vmov 0.0   ;;  %v63_v13 = vld [vmem:[#allocation5] sm:$0xff]  ;;  %s263_s0 = smov [#allocation7]   ;;  %s264_s23 = smov [#allocation8]  }
  0x1c   :  { %78 = vmax.xlane.f32.xlu0 %v77_v1  ;;  %v112_v8 = vsel %vm96_vm2, 1.0, %v262_v7  ;;  %60 = vst.msk [vmem:[#allocation7] sm:$0x1] %vm59_vm1, %v262_v7  ;;  %61 = vst.msk [vmem:[#allocation8] sm:$0x1] %vm59_vm1, %v262_v7  ;;  %s131_s1 = sshll.u32 %s263_s0, 4  ;;  %s132_s1 = int_to_ptr.vmem [resolvable:$true] %s131_s1 }
  0x1d   :  { %s141_s24 = sshll.u32 %s264_s23, 4  ;;  %s212_s26 = scalar_lea.vmem %s132_s1, 16  ;;  %s142_s24 = int_to_ptr.vmem [resolvable:$true] %s141_s24 }
  0x1e   :  { %p213_p10 = scmp.ne.s32.totalorder %s132_s1, %s212_s26  ;;  %s216_s27 = scalar_lea.vmem %s132_s1, 32 }
  0x1f   :  { %p217_p11 = scmp.lt.s32.totalorder %s132_s1, %s132_s1  ;;  %p218_p12 = scmp.lt.s32.totalorder %s216_s27, %s212_s26 }
  0x21   :  { %p219_p13 = por %p218_p12, %p217_p11 }
  0x23   :  { %v94_v33 = vld [vmem:[#allocation7] sm:$0x1]  ;;  %v111_v34 = vld [vmem:[#allocation8] sm:$0x1]  ;;  %p220_p0 = pnand %p219_p13, %p213_p10 }
  0xa5   :  { %v79_v2 = vpop.xlane.xlu0 %78 }
  0xa6   :  { %v80_v3 = vsub.f32 %v62_v0, %v79_v2 }
  0xa8   :  { %v81_v4 = vmul.f32 1.442695, %v80_v3 }
  0xaa   :  { %168 = vpow2.f32 %v81_v4 }
  0xb7   :  { %v169_v5 = vpop.eup %168 }
  0xb8   :  { %v83_v6 = vsel %vm76_vm0, %v169_v5, 0.0 }
  0xb9   :  { %84 = vadd.xlane.f32.xlu0 %v83_v6 }
  0xbd   :  { %113 = vadd.xlane.f32.xlu0 %v112_v8 }
 0x142   :  { %v85_v9 = vpop.xlane.xlu0 %84 }
 0x143   :  { %170 = vlog2.f32 %v85_v9 }
 0x146   :  { %v114_v19 = vpop.xlane.xlu0 %113 }
 0x147   :  { %v115_v20 = vrot.slane %v114_v19, 4 }
 0x149   :  { %v116_v21 = vadd.f32 %v115_v20, %v114_v19 }
 0x14b   :  { %v117_v22 = vrot.slane %v116_v21, 2 }
 0x14d   :  { %v118_v26 = vadd.f32 %v117_v22, %v116_v21 }
 0x14f   :  { %v119_v29 = vrot.slane %v118_v26, 1 }
 0x150   :  { %v171_v10 = vpop.eup %170 }
 0x151   :  { %v87_v11 = vmul.f32 0.6931472, %v171_v10  ;;  %v120_v32 = vadd.f32 %v119_v29, %v118_v26 }
 0x153   :  { %v88_v12 = vadd.f32 %v87_v11, %v79_v2 }
 0x155   :  { %v89_v14 = vsub.f32 %v88_v12, %v62_v0 }
 0x157   :  { %v90_v15 = vmul.f32 %v89_v14, %v63_v13 }
 0x159   :  { %v91_v16 = vsel %vm76_vm0, %v90_v15, 0.0 }
 0x15a   :  { %92 = vadd.xlane.f32.xlu1 %v91_v16 }
 0x1e3   :  { %v93_v17 = vpop.xlane.xlu1 %92 }
 0x1e4   :  { %v97_v18 = vsel %vm96_vm2, %v93_v17, 0.0 }
 0x1e5   :  { %98 = vadd.xlane.f32.xlu1 %v97_v18 }
 0x26e   :  { %v99_v23 = vpop.xlane.xlu1 %98 }
 0x26f   :  { %v100_v24 = vrot.slane %v99_v23, 4 }
 0x271   :  { %v101_v25 = vadd.f32 %v100_v24, %v99_v23 }
 0x273   :  { %v102_v27 = vrot.slane %v101_v25, 2 }
 0x275   :  { %v103_v28 = vadd.f32 %v102_v27, %v101_v25 }
 0x277   :  { %v104_v30 = vrot.slane %v103_v28, 1 }
 0x279   :  { %v105_v31 = vadd.f32 %v104_v30, %v103_v28 }
 0x27b   :  { %159 = vpush %v105_v31 }
 0x27c   :  { %161 = vpush %v120_v32 }
 0x2ac   :  { %s160_s22 = spop %159 }
 0x2ad   :  { %v107_v35 = vstv %s160_s22  ;;  %s162_s25 = spop %161 }
 0x2ae   :  { %v108_v36 = vadd.f32 %v107_v35, %v94_v33  ;;  %v122_v37 = vstv %s162_s25 }
 0x2af   :  { %v123_v38 = vadd.f32 %v122_v37, %v111_v34 }
 0x2b0   :  { %110 = vst.msk [vmem:[#allocation7] sm:$0x1] %vm59_vm1, %v108_v36 }
 0x2b1   :  { %124 = vst.msk [vmem:[#allocation8] sm:$0x1] %vm59_vm1, %v123_v38 }
 0x2b2   :  { %223 = shalt.err (!%p220_p0)
}
 0x2b3   :  { %134 = dma.vmem_to_hbm [thread:$0]  %s132_s1, 16, %s308_s2, [#allocation4]  }
 0x2b4   :  { %s232_s30 = scalar_lea.vmem %s142_s24, 16  ;;  %s236_s4 = scalar_lea.vmem %s142_s24, 32 }
 0x2b5   :  { %p233_p1 = scmp.ne.s32.totalorder %s142_s24, %s232_s30  ;;  %p237_p2 = scmp.lt.s32.totalorder %s142_s24, %s142_s24 }
 0x2b6   :  { %p238_p3 = scmp.lt.s32.totalorder %s236_s4, %s232_s30 }
 0x2b8   :  { %p239_p4 = por %p238_p3, %p237_p2 }
 0x2ba   :  { %p240_p5 = pnand %p239_p4, %p233_p1 }
 0x2bc   :  { %243 = shalt.err (!%p240_p5)
}
 0x2bd   :  { %144 = dma.vmem_to_hbm [thread:$0]  %s142_s24, 16, %s309_s3, [#allocation9]  }
 0x2be   :  { %256 = dma.done.wait [#allocation4], 16  }
 0x2bf   :  { %257 = vsyncadd [#allocation4], 4294967280 }
 0x2c0   :  { %258 = dma.done.wait [#allocation9], 16  }
 0x2c1   :  { %259 = vsyncadd [#allocation9], 4294967280 }
 0x2c2   :  { %151 = vsyncpa [#allocation3], 1 }
 0x2c3   :  { %152 = vsyncpa [#allocation6], 1 }
 0x2c4   :  { %153 = vsyncpa [#allocation4], 1 }
 0x2c5   :  { %154 = vsyncpa [#allocation9], 1 }

</bundles_post_ra>
